<compile_context>
chip_gen: v5e
topology: v5e:2x2
jax: 0.10.0
libtpu: 0.0.40
codegen_flags: <defaults>
</compile_context>

<pallas_src>
import functools
import math

import jax
import jax.numpy as jnp
import numpy as np
from jax.experimental import pallas as pl
from jax.experimental.pallas import tpu as pltpu

_LANES = 128


# ---------------------------------------------------------------------------
# Kernel: a single elementwise add of the resident PE tile (VPU only).
# Batch dim is squeezed away, so both refs are 2-D (rows, lanes/D).
# ---------------------------------------------------------------------------
def _add_pe_kernel(x_ref, pe_ref, o_ref):
    o_ref[...] = x_ref[...] + pe_ref[...]


# ---------------------------------------------------------------------------
# Host-side, once-per-(S, D) PE table (mirrors the PyTorch register_buffer).
# ---------------------------------------------------------------------------
@functools.lru_cache(maxsize=None)
def _pe_table(seq_len: int, embed_dim: int) -> np.ndarray:
    position = np.arange(seq_len, dtype=np.float32)[:, None]          # (S, 1)
    div_term = np.exp(np.arange(0, embed_dim, 2, dtype=np.float32)
                      * (-math.log(10000.0) / embed_dim))             # (D/2,)
    pe = np.zeros((seq_len, embed_dim), dtype=np.float32)
    pe[:, 0::2] = np.sin(position * div_term)
    pe[:, 1::2] = np.cos(position * div_term)
    return pe


def _pick_rows_tile(total_rows: int, max_rows: int) -> int:
    """Full extent if it fits; else largest multiple of 8 <= max_rows that
    divides total_rows; else a plain multiple of 8 (ragged last block)."""
    if total_rows <= max_rows:
        return total_rows
    cap = max(8, (max_rows // 8) * 8)
    for t in range(cap, 7, -8):
        if total_rows % t == 0:
            return t
    return cap


@jax.jit
def _pos_enc_call(x, pe):
    B, S, D = x.shape
    n = S * D
    itemsize = jnp.dtype(x.dtype).itemsize
    cost = pl.CostEstimate(flops=B * n, transcendentals=0,
                           bytes_accessed=(2 * B * n + n) * itemsize)

    if n % _LANES == 0:
        # ---- lane-dense path: (B, S, D) viewed as (B, R, 128) --------------
        R = n // _LANES
        x_r = x.reshape(B, R, _LANES)
        pe_r = pe.reshape(1, R, _LANES)
        tr = _pick_rows_tile(R, max_rows=1024)       # <= 512 KiB per block
        block = (pl.Squeezed(), tr, _LANES)
        out = pl.pallas_call(
            _add_pe_kernel,
            out_shape=jax.ShapeDtypeStruct((B, R, _LANES), x.dtype),
            grid=(B, pl.cdiv(R, tr)),
            in_specs=[pl.BlockSpec(block, lambda b, r: (b, r, 0)),
                      pl.BlockSpec(block, lambda b, r: (0, r, 0))],
            out_specs=pl.BlockSpec(block, lambda b, r: (b, r, 0)),
            input_output_aliases={0: 0},
            compiler_params=pltpu.CompilerParams(
                dimension_semantics=("parallel", "parallel")),
            cost_estimate=cost,
        )(x_r, pe_r)
        return out.reshape(B, S, D)

    # ---- fallback: tile the sequence axis, keep full D ----------------------
    max_rows = max(8, (512 * 1024) // (D * itemsize))
    ts = _pick_rows_tile(S, max_rows)
    pe_r = pe.reshape(1, S, D)
    block = (pl.Squeezed(), ts, D)
    return pl.pallas_call(
        _add_pe_kernel,
        out_shape=jax.ShapeDtypeStruct((B, S, D), x.dtype),
        grid=(B, pl.cdiv(S, ts)),
        in_specs=[pl.BlockSpec(block, lambda b, s: (b, s, 0)),
                  pl.BlockSpec(block, lambda b, s: (0, s, 0))],
        out_specs=pl.BlockSpec(block, lambda b, s: (b, s, 0)),
        input_output_aliases={0: 0},
        compiler_params=pltpu.CompilerParams(
            dimension_semantics=("parallel", "parallel")),
        cost_estimate=cost,
    )(x, pe_r)


def positional_encoding(x):
    """x: (B, S, D) -> x + pe[:, :S, :]  (Pallas TPU kernel)."""
    _, S, D = x.shape
    pe = jnp.asarray(_pe_table(S, D), dtype=x.dtype)     # (S, D), built once
    return _pos_enc_call(x, pe)


# ---------------------------------------------------------------------------
# Pure-JAX replica of the PyTorch module (verification only).
# ---------------------------------------------------------------------------
def _reference(x):
    B, S, D = x.shape
    position = jnp.arange(S, dtype=jnp.float32)[:, None]
    div_term = jnp.exp(jnp.arange(0, D, 2, dtype=jnp.float32)
                       * (-math.log(10000.0) / D))
    pe = jnp.zeros((S, D), jnp.float32)
    pe = pe.at[:, 0::2].set(jnp.sin(position * div_term))
    pe = pe.at[:, 1::2].set(jnp.cos(position * div_term))
    return x + pe[None, :, :]


if __name__ == "__main__":
    key = jax.random.PRNGKey(0)
    B, S, D = 2, 8, 32          # batch=2, seq=8, embed_dim=32
    x = jax.random.normal(key, (B, S, D), dtype=jnp.float32)

    out = positional_encoding(x)
    out = jax.block_until_ready(out)

    ref = _reference(x)
    assert out.shape == (B, S, D)
    assert jnp.allclose(out, ref, atol=1e-5, rtol=1e-5), "mismatch vs reference"

    print("KERNEL_OK")
</pallas_src>

<mosaic_0001>
module attributes {stable_mosaic.version = 11 : i64} {
  func.func @_add_pe_kernel(%arg0: i32, %arg1: i32, %arg2: memref<1x2x128xf32, #tpu.memory_space<vmem>>, %arg3: memref<1x2x128xf32, #tpu.memory_space<vmem>>, %arg4: memref<1x2x128xf32, #tpu.memory_space<vmem>>) attributes {dimension_semantics = [#tpu.dimension_semantics<parallel>, #tpu.dimension_semantics<parallel>], iteration_bounds = array<i64: 2, 1>, scalar_prefetch = 0 : i64, scratch_operands = 0 : i64, tpu.core_type = #tpu.core_type<tc>, window_params = [{transform_indices = @transform_0, window_bounds = array<i64: 1, 2, 128>}, {transform_indices = @transform_1, window_bounds = array<i64: 1, 2, 128>}, {transform_indices = @transform_2, window_bounds = array<i64: 1, 2, 128>}]} {
    %c0 = arith.constant 0 : index
    %c0_0 = arith.constant 0 : index
    %c0_1 = arith.constant 0 : index
    %0 = vector.load %arg2[%c0, %c0_0, %c0_1] : memref<1x2x128xf32, #tpu.memory_space<vmem>>, vector<1x2x128xf32>
    %1 = vector.shape_cast %0 : vector<1x2x128xf32> to vector<2x128xf32>
    %c0_2 = arith.constant 0 : index
    %c0_3 = arith.constant 0 : index
    %c0_4 = arith.constant 0 : index
    %2 = vector.load %arg3[%c0_2, %c0_3, %c0_4] : memref<1x2x128xf32, #tpu.memory_space<vmem>>, vector<1x2x128xf32>
    %3 = vector.shape_cast %2 : vector<1x2x128xf32> to vector<2x128xf32>
    %4 = arith.addf %1, %3 : vector<2x128xf32>
    %c0_5 = arith.constant 0 : index
    %c0_6 = arith.constant 0 : index
    %c0_7 = arith.constant 0 : index
    %5 = vector.load %arg4[%c0_5, %c0_6, %c0_7] : memref<1x2x128xf32, #tpu.memory_space<vmem>>, vector<1x2x128xf32>
    %6 = vector.shape_cast %5 : vector<1x2x128xf32> to vector<2x128xf32>
    %7 = vector.shape_cast %4 : vector<2x128xf32> to vector<1x2x128xf32>
    tpu.vector_store %arg4[%c0_5, %c0_6, %c0_7], %7 {strides = array<i32>} : memref<1x2x128xf32, #tpu.memory_space<vmem>>, vector<1x2x128xf32>,
    return
  }
  func.func @transform_0(%arg0: i32, %arg1: i32) -> (i32, i32, i32) {
    %c0_i32 = arith.constant 0 : i32
    %c0_i32_0 = arith.constant 0 : i32
    return %arg0, %arg1, %c0_i32 : i32, i32, i32
  }
  func.func @transform_1(%arg0: i32, %arg1: i32) -> (i32, i32, i32) {
    %c0_i32 = arith.constant 0 : i32
    %c0_i32_0 = arith.constant 0 : i32
    %c0_i32_1 = arith.constant 0 : i32
    return %c0_i32, %arg1, %c0_i32_0 : i32, i32, i32
  }
  func.func @transform_2(%arg0: i32, %arg1: i32) -> (i32, i32, i32) {
    %c0_i32 = arith.constant 0 : i32
    %c0_i32_0 = arith.constant 0 : i32
    return %arg0, %arg1, %c0_i32 : i32, i32, i32
  }
}

</mosaic_0001>

<bundles_post_ra>
// kernel: _pos_enc_call.1
= control target key start
LH: loop header
LB: loop body
LE: loop exit
PB: predicated region body
PF: predicated region fallthrough
CT: control target
= control target key end

     0   :  { %s354_s9 = smov 0   ;;  %s331_s10 = smov 0   ;;  %s368_s0 = inlined_call_operand.vmem [shape: f32[2,2,128], index: 0, kind: input, shape index: {}, may-alias: {0,2}]   ;;  %s369_s1 = inlined_call_operand.vmem [shape: f32[1,2,128], index: 1, kind: input, shape index: {}]   ;;  %s370_s2 = inlined_call_operand.vmem [shape: f32[2,2,128], index: 2, kind: output, shape index: {}, may-alias: {0,2}]  }
   0x1   :  { %s335_s11 = smov 0  }
   0x2 LB: > { %s24_s12 = sadd.s32 1, %s333_s10  ;;  %p286_p0 = scmp.ge.s32.totalorder %s337_s11, 1  ;;  %s337_s11 = sphi %s335_s11, %s12_s11   ;;  %s333_s10 = sphi %s331_s10, %s332_s10   ;;  %s329_s9 = sphi %s354_s9, %s371_s9  }
   0x3   : > { %p26_p1 = scmp.ge.s32.totalorder %s24_s12, 2  ;;  %p139_p2 = scmp.lt.s32.totalorder %s337_s11, 3 }
   0x5   : > { %s373_s12 = smov (%p26_p1, %s24_s12), 0  ;;  %p140_p3 = pnand %p286_p0, %p139_p2 }
   0x6   : > { %p169_p4 = scmp.lt.s32.totalorder (!%p140_p3), %s329_s9, 1 }
   0x7   : > { %143 = sbr.rel (%p140_p3) target bundleno = 19 (0x13), region = 28 }
   0xc   : > { %s375_s9 = smov (!%p169_p4, %s329_s9), 1  ;;  %v188_v0 = vld [vmem:[%s369_s1] sm:$0x3] }
   0xd   : > { %s287_s13 = sshll.u32 %s375_s9, 1 }
   0xe   : > { %s175_s18 = scalar_lea.vmem %s368_s0, %s287_s13  ;;  %s186_s21 = scalar_lea.vmem %s370_s2, %s287_s13 }
   0xf   : > { %v187_v1 = vld [vmem:[%s175_s18] sm:$0x3] }
  0x10   : > { %v189_v2 = vadd.f32 %v188_v0, %v187_v1 }
  0x12   : > { %190 = vst [vmem:[%s186_s21] sm:$0x3] %v189_v2 }
  0x13 PF: > { %s12_s11 = sadd.s32 1, %s337_s11   ;;  %s371_s9 = smov %s333_s10 }
  0x14   : > { %p9_p5 = scmp.ge.s32.totalorder %s12_s11, 4   ;;  %s332_s10 = smov %s373_s12  }
  0x16   :  { %11 = sbr.rel (!%p9_p5) target bundleno = 2 (0x2), region = 61 }

</bundles_post_ra>
